<compile_context>
chip_gen: v7x
topology: tpu7x:2x2x1
jax: 0.10.0
libtpu: 0.0.40
codegen_flags: <defaults>
</compile_context>

<pallas_src>
import functools

import jax
import jax.numpy as jnp
from jax.experimental import pallas as pl
from jax.experimental.pallas import tpu as pltpu


def _generator_kernel(x_ref, w1_ref, b1_ref, w2_ref, b2_ref, wa_ref, ba_ref,
                      o_ref, y_acc, *, valid_t):
    k = pl.program_id(1)

    @pl.when(k == 0)
    def _init():
        # Fold the second FFN bias into the accumulator init.
        y_acc[...] = jnp.broadcast_to(b2_ref[...], y_acc.shape)

    # Partial FFN for this d_ff tile: relu(x @ W1[:, k] + b1[k]) @ W2[k, :].
    # (ReLU is elementwise over d_ff, so per-tile accumulation is exact.)
    h = jnp.dot(x_ref[...], w1_ref[...],
                preferred_element_type=jnp.float32) + b1_ref[...]
    h = jnp.maximum(h, 0.0)
    y_acc[...] += jnp.dot(h.astype(jnp.bfloat16), w2_ref[...],
                          preferred_element_type=jnp.float32)

    @pl.when(k == pl.num_programs(1) - 1)
    def _finalize():
        y = y_acc[...]
        z = jnp.dot(y.astype(jnp.bfloat16), wa_ref[...],
                    preferred_element_type=jnp.float32) + ba_ref[...]
        t_pad = z.shape[-1]
        if t_pad > valid_t:
            # Mask lane padding so it does not perturb the softmax.
            col = jax.lax.broadcasted_iota(jnp.int32, z.shape, 1)
            z = jnp.where(col < valid_t, z, jnp.float32(-1e30))
        # Numerically-stable log_softmax over the last dim.
        m = jnp.max(z, axis=-1, keepdims=True)
        s = z - m
        lse = jnp.log(jnp.sum(jnp.exp(s), axis=-1, keepdims=True))
        o_ref[...] = (s - lse).astype(o_ref.dtype)


def _round_up(v, m):
    return (v + m - 1) // m * m


def model_generator_forward(x, params, *, tile_m=128, tile_k=512):
    """x: (batch, seq, model_size) float32 -> (batch, seq, target_size) f32."""
    w1, b1, w2, b2, wa, ba = (params[k] for k in
                              ("w1", "b1", "w2", "b2", "wa", "ba"))
    B, S, D = x.shape
    d_ff = w1.shape[1]
    T = wa.shape[1]
    M = B * S

    # Hardware-aligned (lane = 128) padded sizes; no divisibility asserts.
    D_pad = _round_up(D, 128)
    T_pad = _round_up(T, 128)
    tile_k = min(tile_k, _round_up(d_ff, 128))
    F_pad = _round_up(d_ff, tile_k)
    M_pad = _round_up(M, tile_m)

    def pad2(a, rows, cols, dtype):
        a = a.astype(dtype)
        return jnp.pad(a, ((0, rows - a.shape[0]), (0, cols - a.shape[1])))

    # bf16 MXU inputs (cast once here), f32 biases / accumulation.
    x2 = pad2(x.reshape(M, D), M_pad, D_pad, jnp.bfloat16)
    w1p = pad2(w1, D_pad, F_pad, jnp.bfloat16)
    w2p = pad2(w2, F_pad, D_pad, jnp.bfloat16)
    wap = pad2(wa, D_pad, T_pad, jnp.bfloat16)
    b1p = pad2(b1.reshape(1, -1), 1, F_pad, jnp.float32)
    b2p = pad2(b2.reshape(1, -1), 1, D_pad, jnp.float32)
    bap = pad2(ba.reshape(1, -1), 1, T_pad, jnp.float32)

    grid = (M_pad // tile_m, F_pad // tile_k)
    kernel = functools.partial(_generator_kernel, valid_t=T)

    out = pl.pallas_call(
        kernel,
        out_shape=jax.ShapeDtypeStruct((M_pad, T_pad), jnp.float32),
        grid_spec=pltpu.PrefetchScalarGridSpec(
            num_scalar_prefetch=0,
            grid=grid,
            in_specs=[
                pl.BlockSpec((tile_m, D_pad), lambda i, k: (i, 0)),   # x rows
                pl.BlockSpec((D_pad, tile_k), lambda i, k: (0, k)),   # W1 tile
                pl.BlockSpec((1, tile_k), lambda i, k: (0, k)),       # b1 tile
                pl.BlockSpec((tile_k, D_pad), lambda i, k: (k, 0)),   # W2 tile
                pl.BlockSpec((1, D_pad), lambda i, k: (0, 0)),        # b2
                pl.BlockSpec((D_pad, T_pad), lambda i, k: (0, 0)),    # Wa
                pl.BlockSpec((1, T_pad), lambda i, k: (0, 0)),        # ba
            ],
            out_specs=pl.BlockSpec((tile_m, T_pad), lambda i, k: (i, 0)),
            scratch_shapes=[pltpu.VMEM((tile_m, D_pad), jnp.float32)],
        ),
        compiler_params=pltpu.CompilerParams(
            dimension_semantics=("parallel", "arbitrary"),
            vmem_limit_bytes=48 * 1024 * 1024,
        ),
    )(x2, w1p, b1p, w2p, b2p, wap, bap)

    return out[:M, :T].reshape(B, S, T)


def init_params(key, model_size, target_size):
    d_ff = 8 * target_size
    ks = jax.random.split(key, 3)
    scale = 0.02
    return {
        "w1": scale * jax.random.normal(ks[0], (model_size, d_ff), jnp.float32),
        "b1": jnp.zeros((d_ff,), jnp.float32),
        "w2": scale * jax.random.normal(ks[1], (d_ff, model_size), jnp.float32),
        "b2": jnp.zeros((model_size,), jnp.float32),
        "wa": scale * jax.random.normal(ks[2], (model_size, target_size),
                                        jnp.float32),
        "ba": jnp.zeros((target_size,), jnp.float32),
    }


def _reference_forward(x, p):
    h = jnp.maximum(x @ p["w1"] + p["b1"], 0.0)
    y = h @ p["w2"] + p["b2"]
    z = y @ p["wa"] + p["ba"]
    return jax.nn.log_softmax(z, axis=-1)


if __name__ == "__main__":
    batch, seq, model_size, target_size = 2, 8, 32, 16

    key = jax.random.PRNGKey(0)
    kx, kp = jax.random.split(key)
    x = jax.random.normal(kx, (batch, seq, model_size), jnp.float32)
    params = init_params(kp, model_size, target_size)

    out = jax.block_until_ready(model_generator_forward(x, params))

    ref = _reference_forward(x, params)
    assert out.shape == (batch, seq, target_size)
    max_err = jnp.max(jnp.abs(out - ref))
    assert max_err < 5e-3, f"mismatch vs reference: max|err|={max_err}"

    print("KERNEL_OK")
</pallas_src>

<mosaic_0001>
module attributes {stable_mosaic.version = 11 : i64} {
  func.func @_generator_kernel(%arg0: i32, %arg1: i32, %arg2: memref<128x128xbf16, #tpu.memory_space<vmem>>, %arg3: memref<128x128xbf16, #tpu.memory_space<vmem>>, %arg4: memref<1x128xf32, #tpu.memory_space<vmem>>, %arg5: memref<128x128xbf16, #tpu.memory_space<vmem>>, %arg6: memref<1x128xf32, #tpu.memory_space<vmem>>, %arg7: memref<128x128xbf16, #tpu.memory_space<vmem>>, %arg8: memref<1x128xf32, #tpu.memory_space<vmem>>, %arg9: memref<128x128xf32, #tpu.memory_space<vmem>>, %arg10: memref<128x128xf32, #tpu.memory_space<vmem>>) attributes {dimension_semantics = [#tpu.dimension_semantics<parallel>, #tpu.dimension_semantics<arbitrary>], iteration_bounds = array<i64: 1, 1>, scalar_prefetch = 0 : i64, scratch_operands = 1 : i64, tpu.core_type = #tpu.core_type<tc>, window_params = [{transform_indices = @transform_0, window_bounds = array<i64: 128, 128>}, {transform_indices = @transform_1, window_bounds = array<i64: 128, 128>}, {transform_indices = @transform_2, window_bounds = array<i64: 1, 128>}, {transform_indices = @transform_3, window_bounds = array<i64: 128, 128>}, {pipeline_mode = #tpu.pipeline_mode<synchronous>, transform_indices = @transform_4, window_bounds = array<i64: 1, 128>}, {pipeline_mode = #tpu.pipeline_mode<synchronous>, transform_indices = @transform_5, window_bounds = array<i64: 128, 128>}, {pipeline_mode = #tpu.pipeline_mode<synchronous>, transform_indices = @transform_6, window_bounds = array<i64: 1, 128>}, {transform_indices = @transform_7, window_bounds = array<i64: 128, 128>}]} {
    %c0_i32 = arith.constant 0 : i32
    %0 = arith.cmpi eq, %arg1, %c0_i32 : i32
    %1 = arith.extui %0 : i1 to i32
    %c0_i32_0 = arith.constant 0 : i32
    %2 = arith.cmpi ne, %1, %c0_i32_0 : i32
    scf.if %2 {
      %c0_16 = arith.constant 0 : index
      %c0_17 = arith.constant 0 : index
      %20 = vector.load %arg6[%c0_16, %c0_17] : memref<1x128xf32, #tpu.memory_space<vmem>>, vector<1x128xf32>
      %21 = vector.shape_cast %20 : vector<1x128xf32> to vector<1x128xf32>
      %22 = vector.broadcast %21 : vector<1x128xf32> to vector<128x128xf32>
      %c0_18 = arith.constant 0 : index
      %c0_19 = arith.constant 0 : index
      %23 = vector.load %arg10[%c0_18, %c0_19] : memref<128x128xf32, #tpu.memory_space<vmem>>, vector<128x128xf32>
      tpu.vector_store %arg10[%c0_18, %c0_19], %22 {strides = array<i32>} : memref<128x128xf32, #tpu.memory_space<vmem>>, vector<128x128xf32>,
    } else {
    }
    %c0 = arith.constant 0 : index
    %c0_1 = arith.constant 0 : index
    %3 = vector.load %arg2[%c0, %c0_1] : memref<128x128xbf16, #tpu.memory_space<vmem>>, vector<128x128xbf16>
    %c0_2 = arith.constant 0 : index
    %c0_3 = arith.constant 0 : index
    %4 = vector.load %arg3[%c0_2, %c0_3] : memref<128x128xbf16, #tpu.memory_space<vmem>>, vector<128x128xbf16>
    %cst = arith.constant dense<0.000000e+00> : vector<128x128xf32>
    %5 = tpu.matmul %3, %4, %cst {dimension_numbers = #tpu.dot_dimension_numbers<[1], [0], [0], [1], [0, 0, 1, 1], [], []>} : vector<128x128xbf16>, vector<128x128xbf16>, vector<128x128xf32> -> vector<128x128xf32>
    %c0_4 = arith.constant 0 : index
    %c0_5 = arith.constant 0 : index
    %6 = vector.load %arg4[%c0_4, %c0_5] : memref<1x128xf32, #tpu.memory_space<vmem>>, vector<1x128xf32>
    %7 = vector.broadcast %6 : vector<1x128xf32> to vector<128x128xf32>
    %8 = arith.addf %5, %7 : vector<128x128xf32>
    %cst_6 = arith.constant 0.000000e+00 : f32
    %9 = vector.broadcast %cst_6 : f32 to vector<128x128xf32>
    %10 = arith.maximumf %8, %9 : vector<128x128xf32>
    %c0_7 = arith.constant 0 : index
    %c0_8 = arith.constant 0 : index
    %11 = vector.load %arg10[%c0_7, %c0_8] : memref<128x128xf32, #tpu.memory_space<vmem>>, vector<128x128xf32>
    %12 = arith.truncf %10 : vector<128x128xf32> to vector<128x128xbf16>
    %c0_9 = arith.constant 0 : index
    %c0_10 = arith.constant 0 : index
    %13 = vector.load %arg5[%c0_9, %c0_10] : memref<128x128xbf16, #tpu.memory_space<vmem>>, vector<128x128xbf16>
    %cst_11 = arith.constant dense<0.000000e+00> : vector<128x128xf32>
    %14 = tpu.matmul %12, %13, %cst_11 {dimension_numbers = #tpu.dot_dimension_numbers<[1], [0], [0], [1], [0, 0, 1, 1], [], []>} : vector<128x128xbf16>, vector<128x128xbf16>, vector<128x128xf32> -> vector<128x128xf32>
    %15 = arith.addf %11, %14 : vector<128x128xf32>
    %c0_12 = arith.constant 0 : index
    %c0_13 = arith.constant 0 : index
    %16 = vector.load %arg10[%c0_12, %c0_13] : memref<128x128xf32, #tpu.memory_space<vmem>>, vector<128x128xf32>
    tpu.vector_store %arg10[%c0_12, %c0_13], %15 {strides = array<i32>} : memref<128x128xf32, #tpu.memory_space<vmem>>, vector<128x128xf32>,
    %c0_i32_14 = arith.constant 0 : i32
    %17 = arith.cmpi eq, %arg1, %c0_i32_14 : i32
    %18 = arith.extui %17 : i1 to i32
    %c0_i32_15 = arith.constant 0 : i32
    %19 = arith.cmpi ne, %18, %c0_i32_15 : i32
    scf.if %19 {
      %c0_16 = arith.constant 0 : index
      %c0_17 = arith.constant 0 : index
      %20 = vector.load %arg10[%c0_16, %c0_17] : memref<128x128xf32, #tpu.memory_space<vmem>>, vector<128x128xf32>
      %21 = arith.truncf %20 : vector<128x128xf32> to vector<128x128xbf16>
      %c0_18 = arith.constant 0 : index
      %c0_19 = arith.constant 0 : index
      %22 = vector.load %arg7[%c0_18, %c0_19] : memref<128x128xbf16, #tpu.memory_space<vmem>>, vector<128x128xbf16>
      %cst_20 = arith.constant dense<0.000000e+00> : vector<128x128xf32>
      %23 = tpu.matmul %21, %22, %cst_20 {dimension_numbers = #tpu.dot_dimension_numbers<[1], [0], [0], [1], [0, 0, 1, 1], [], []>} : vector<128x128xbf16>, vector<128x128xbf16>, vector<128x128xf32> -> vector<128x128xf32>
      %c0_21 = arith.constant 0 : index
      %c0_22 = arith.constant 0 : index
      %24 = vector.load %arg8[%c0_21, %c0_22] : memref<1x128xf32, #tpu.memory_space<vmem>>, vector<1x128xf32>
      %25 = vector.broadcast %24 : vector<1x128xf32> to vector<128x128xf32>
      %26 = arith.addf %23, %25 : vector<128x128xf32>
      %27 = tpu.iota {dimensions = array<i32: 1>} : vector<128x128xi32>
      %c16_i32 = arith.constant 16 : i32
      %28 = vector.broadcast %c16_i32 : i32 to vector<128x128xi32>
      %29 = arith.cmpi slt, %27, %28 : vector<128x128xi32>
      %cst_23 = arith.constant -1.000000e+30 : f32
      %30 = vector.broadcast %cst_23 : f32 to vector<128x128xf32>
      %31 = arith.select %29, %26, %30 : vector<128x128xi1>, vector<128x128xf32>
      %cst_24 = arith.constant dense<0xFF800000> : vector<128xf32>
      %32 = vector.multi_reduction <maximumf>, %31, %cst_24 [1] : vector<128x128xf32> to vector<128xf32>
      %33 = vector.shape_cast %32 : vector<128xf32> to vector<128x1xf32>
      %34 = vector.broadcast %33 : vector<128x1xf32> to vector<128x128xf32>
      %35 = arith.subf %31, %34 : vector<128x128xf32>
      %36 = math.exp %35 : vector<128x128xf32>
      %cst_25 = arith.constant dense<0.000000e+00> : vector<128xf32>
      %37 = vector.multi_reduction <add>, %36, %cst_25 [1] : vector<128x128xf32> to vector<128xf32>
      %38 = vector.shape_cast %37 : vector<128xf32> to vector<128x1xf32>
      %39 = math.log %38 : vector<128x1xf32>
      %40 = vector.broadcast %39 : vector<128x1xf32> to vector<128x128xf32>
      %41 = arith.subf %35, %40 : vector<128x128xf32>
      %c0_26 = arith.constant 0 : index
      %c0_27 = arith.constant 0 : index
      %42 = vector.load %arg9[%c0_26, %c0_27] : memref<128x128xf32, #tpu.memory_space<vmem>>, vector<128x128xf32>
      tpu.vector_store %arg9[%c0_26, %c0_27], %41 {strides = array<i32>} : memref<128x128xf32, #tpu.memory_space<vmem>>, vector<128x128xf32>,
    } else {
    }
    return
  }
  func.func @transform_0(%arg0: i32, %arg1: i32) -> (i32, i32) {
    %c0_i32 = arith.constant 0 : i32
    %c0_i32_0 = arith.constant 0 : i32
    return %arg0, %c0_i32 : i32, i32
  }
  func.func @transform_1(%arg0: i32, %arg1: i32) -> (i32, i32) {
    %c0_i32 = arith.constant 0 : i32
    %c0_i32_0 = arith.constant 0 : i32
    return %c0_i32, %arg1 : i32, i32
  }
  func.func @transform_2(%arg0: i32, %arg1: i32) -> (i32, i32) {
    %c0_i32 = arith.constant 0 : i32
    %c0_i32_0 = arith.constant 0 : i32
    return %c0_i32, %arg1 : i32, i32
  }
  func.func @transform_3(%arg0: i32, %arg1: i32) -> (i32, i32) {
    %c0_i32 = arith.constant 0 : i32
    %c0_i32_0 = arith.constant 0 : i32
    return %arg1, %c0_i32 : i32, i32
  }
  func.func @transform_4(%arg0: i32, %arg1: i32) -> (i32, i32) {
    %c0_i32 = arith.constant 0 : i32
    %c0_i32_0 = arith.constant 0 : i32
    %c0_i32_1 = arith.constant 0 : i32
    return %c0_i32, %c0_i32_0 : i32, i32
  }
  func.func @transform_5(%arg0: i32, %arg1: i32) -> (i32, i32) {
    %c0_i32 = arith.constant 0 : i32
    %c0_i32_0 = arith.constant 0 : i32
    %c0_i32_1 = arith.constant 0 : i32
    return %c0_i32, %c0_i32_0 : i32, i32
  }
  func.func @transform_6(%arg0: i32, %arg1: i32) -> (i32, i32) {
    %c0_i32 = arith.constant 0 : i32
    %c0_i32_0 = arith.constant 0 : i32
    %c0_i32_1 = arith.constant 0 : i32
    return %c0_i32, %c0_i32_0 : i32, i32
  }
  func.func @transform_7(%arg0: i32, %arg1: i32) -> (i32, i32) {
    %c0_i32 = arith.constant 0 : i32
    %c0_i32_0 = arith.constant 0 : i32
    return %arg0, %c0_i32 : i32, i32
  }
}

</mosaic_0001>

<bundles_post_ra>
// kernel: tpu_custom_call.1
= control target key start
LH: loop header
LB: loop body
LE: loop exit
PB: predicated region body
PF: predicated region fallthrough
CT: control target
= control target key end

     0   :  { %12 = vsyncpa [#allocation4], 0  ;;  %s1705_s0 = inlined_call_operand.hbm [shape: bf16[128,128], index: 0, kind: input, shape index: {}]   ;;  %s1706_s1 = inlined_call_operand.hbm [shape: bf16[128,128], index: 1, kind: input, shape index: {}]   ;;  %s1707_s2 = inlined_call_operand.vmem [shape: f32[1,128], index: 2, kind: input, shape index: {}]   ;;  %s1708_s3 = inlined_call_operand.hbm [shape: bf16[128,128], index: 3, kind: input, shape index: {}]   ;;  %s1709_s4 = inlined_call_operand.vmem [shape: f32[1,128], index: 4, kind: input, shape index: {}]   ;;  %s1710_s5 = inlined_call_operand.hbm [shape: bf16[128,128], index: 5, kind: input, shape index: {}]   ;;  %s1711_s6 = inlined_call_operand.vmem [shape: f32[1,128], index: 6, kind: input, shape index: {}]   ;;  %s1712_s7 = inlined_call_operand.hbm [shape: f32[128,128], index: 7, kind: output, shape index: {}]  }
   0x1   :  { %13 = vsyncpa [#allocation7], 0 }
   0x2   :  { %14 = vsyncpa [#allocation10], 0 }
   0x3   :  { %15 = vsyncpa [#allocation5], 0  ;;  %s1402_s24 = smov [#allocation6]   ;;  %s1403_s26 = smov [#allocation3]  }
   0x4   :  { %s33_s25 = sshll.u32 %s1402_s24, 4  ;;  %s21_s27 = sshll.u32 %s1403_s26, 4  ;;  %s34_s25 = int_to_ptr.vmem [resolvable:$true] %s33_s25  ;;  %s1451_s27 = int_to_ptr.vmem [resolvable:$true] %s21_s27 }
   0x5   :  { %s1284_s30 = scalar_lea.hbm %s1706_s1, 1024 }
   0x6   :  { %p1285_p0 = scmp.ne.s32.totalorder %s1706_s1, %s1284_s30  ;;  %p1288_p1 = scmp.lt.u32.totalorder %s1284_s30, %s1706_s1 }
   0x8   :  { %p1290_p2 = pnand %p1288_p1, %p1285_p0 }
   0xa   :  { %1293 = shalt.err (!%p1290_p2)
}
   0xb   :  { %s1294_s12 = scalar_lea.vmem %s34_s25, 1024  ;;  %p1299_p4 = scmp.lt.s32.totalorder %s34_s25, %s34_s25 }
   0xc   :  { %p1295_p3 = scmp.ne.s32.totalorder %s34_s25, %s1294_s12  ;;  %p1300_p5 = scmp.lt.s32.totalorder %s1294_s12, %s1294_s12 }
   0xe   :  { %p1301_p6 = por %p1300_p5, %p1299_p4 }
  0x10   :  { %p1302_p7 = pnand %p1301_p6, %p1295_p3 }
  0x12   :  { %1305 = shalt.err (!%p1302_p7)
}
  0x13   :  { %s1404_s13 = smov 64   ;;  %s1405_s14 = smov 4  }
  0x14   :  { %39 = dma.hbm_to_vmem [thread:$0]  %s1706_s1, 1024, %s34_s25, [#allocation7], %s1404_s13, %s1404_s13, %s1405_s14  }
  0x15   :  { %s1306_s19 = scalar_lea.hbm %s1705_s0, 1024 }
  0x16   :  { %p1307_p8 = scmp.ne.s32.totalorder %s1705_s0, %s1306_s19  ;;  %p1310_p9 = scmp.lt.u32.totalorder %s1306_s19, %s1705_s0 }
  0x18   :  { %p1312_p10 = pnand %p1310_p9, %p1307_p8 }
  0x1a   :  { %1315 = shalt.err (!%p1312_p10)
}
  0x1b   :  { %s1316_s24 = scalar_lea.vmem %s1451_s27, 1024  ;;  %p1321_p12 = scmp.lt.s32.totalorder %s1451_s27, %s1451_s27 }
  0x1c   :  { %p1317_p11 = scmp.ne.s32.totalorder %s1451_s27, %s1316_s24  ;;  %p1322_p13 = scmp.lt.s32.totalorder %s1316_s24, %s1316_s24 }
  0x1e   :  { %p1323_p0 = por %p1322_p13, %p1321_p12 }
  0x20   :  { %p1324_p1 = pnand %p1323_p0, %p1317_p11 }
  0x22   :  { %1327 = shalt.err (!%p1324_p1)
}
  0x23   :  { %27 = dma.hbm_to_vmem [thread:$0]  %s1705_s0, 1024, %s1451_s27, [#allocation4], %s1404_s13, %s1404_s13, %s1405_s14  }
  0x24   :  { %s1406_s26 = smov [#allocation8]   ;;  %s1407_s29 = smov [#allocation9]  }
  0x25   :  { %s47_s28 = sshll.u32 %s1406_s26, 4  ;;  %s61_s30 = sshll.u32 %s1407_s29, 4  ;;  %s48_s28 = int_to_ptr.vmem [resolvable:$true] %s47_s28  ;;  %s1488_s30 = int_to_ptr.vmem [resolvable:$true] %s61_s30 }
  0x26   :  { %s1328_s10 = scalar_lea.hbm %s1708_s3, 1024 }
  0x27   :  { %p1329_p2 = scmp.ne.s32.totalorder %s1708_s3, %s1328_s10  ;;  %p1332_p3 = scmp.lt.u32.totalorder %s1328_s10, %s1708_s3 }
  0x29   :  { %p1334_p4 = pnand %p1332_p3, %p1329_p2 }
  0x2b   :  { %1337 = shalt.err (!%p1334_p4)
}
  0x2c   :  { %s1338_s0 = scalar_lea.vmem %s48_s28, 1024  ;;  %p1343_p6 = scmp.lt.s32.totalorder %s48_s28, %s48_s28 }
  0x2d   :  { %p1339_p5 = scmp.ne.s32.totalorder %s48_s28, %s1338_s0  ;;  %p1344_p7 = scmp.lt.s32.totalorder %s1338_s0, %s1338_s0 }
  0x2f   :  { %p1345_p8 = por %p1344_p7, %p1343_p6 }
  0x31   :  { %p1346_p9 = pnand %p1345_p8, %p1339_p5 }
  0x33   :  { %1349 = shalt.err (!%p1346_p9)
}
  0x34   :  { %53 = dma.hbm_to_vmem [thread:$0]  %s1708_s3, 1024, %s48_s28, [#allocation7], %s1404_s13, %s1404_s13, %s1405_s14  }
  0x35   :  { %s1350_s20 = scalar_lea.hbm %s1710_s5, 1024 }
  0x36   :  { %p1351_p10 = scmp.ne.s32.totalorder %s1710_s5, %s1350_s20  ;;  %p1354_p11 = scmp.lt.u32.totalorder %s1350_s20, %s1710_s5 }
  0x38   :  { %p1356_p12 = pnand %p1354_p11, %p1351_p10 }
  0x3a   :  { %1359 = shalt.err (!%p1356_p12)
}
  0x3b   :  { %s1360_s1 = scalar_lea.vmem %s1488_s30, 1024  ;;  %p1365_p0 = scmp.lt.s32.totalorder %s1488_s30, %s1488_s30 }
  0x3c   :  { %p1361_p13 = scmp.ne.s32.totalorder %s1488_s30, %s1360_s1  ;;  %p1366_p1 = scmp.lt.s32.totalorder %s1360_s1, %s1360_s1 }
  0x3e   :  { %p1367_p2 = por %p1366_p1, %p1365_p0 }
  0x40   :  { %p1368_p3 = pnand %p1367_p2, %p1361_p13 }
  0x42   :  { %1371 = shalt.err (!%p1368_p3)
}
  0x43   :  { %67 = dma.hbm_to_vmem [thread:$0]  %s1710_s5, 1024, %s1488_s30, [#allocation10], %s1404_s13, %s1404_s13, %s1405_s14  }
  0x44   :  { %1394 = dma.done.wait [#allocation4], 1024  }
  0x45   :  { %1395 = vsyncadd [#allocation4], 4294966272 }
  0x46   :  { %1396 = dma.done.wait [#allocation7], 2048  }
  0x47   :  { %1397 = vsyncadd [#allocation7], 4294965248 }
  0x48   :  { %1398 = dma.done.wait [#allocation10], 1024  }
  0x49   :  { %1399 = vsyncadd [#allocation10], 4294966272  ;;  %v1188_v0 = vld [vmem:[#allocation6] sm:$0xff]   ;;  %v1189_v1 = vld [vmem:[#allocation6 + $0x8] sm:$0xff]  }
  0x4a   :  { %1067 = vmatprep.subr.bf16.mxu0 %v1188_v0  ;;  %v1190_v2 = vld [vmem:[#allocation6 + $0x10] sm:$0xff]   ;;  %v1191_v3 = vld [vmem:[#allocation6 + $0x18] sm:$0xff]   ;;  %v1196_v4 = vld [vmem:[#allocation3] sm:$0xff]  }
  0x4b   :  { %1068 = vmatpush3.bf16.msra.mxu0 %v1188_v0  ;;  %1083 = vmatprep.mubr.bf16.mxu0 %v1196_v4  ;;  %v1192_v5 = vld [vmem:[#allocation6 + $0x20] sm:$0xff]   ;;  %v1193_v6 = vld [vmem:[#allocation6 + $0x28] sm:$0xff]   ;;  %v1194_v9 = vld [vmem:[#allocation6 + $0x30] sm:$0xff]  }
  0x4c   :  { %1069 = vmatprep.subr.bf16.mxu0 %v1189_v1  ;;  %v1204_v7 = vld [vmem:[#allocation8] sm:$0xff]   ;;  %v1205_v8 = vld [vmem:[#allocation8 + $0x8] sm:$0xff]   ;;  %v1206_v10 = vld [vmem:[#allocation8 + $0x10] sm:$0xff]  }
  0x4d   :  { %1099 = vmatprep.subr.bf16.mxu1 %v1204_v7  ;;  %v1195_v11 = vld [vmem:[#allocation6 + $0x38] sm:$0xff]   ;;  %v1208_v13 = vld [vmem:[#allocation8 + $0x20] sm:$0xff]   ;;  %v1197_v14 = vld [vmem:[#allocation3 + $0x8] sm:$0xff]  }
  0x4e   :  { %1100 = vmatpush3.bf16.msra.mxu1 %v1204_v7  ;;  %v1207_v12 = vld [vmem:[#allocation8 + $0x18] sm:$0xff]   ;;  %v1198_v15 = vld [vmem:[#allocation3 + $0x10] sm:$0xff]   ;;  %v1209_v16 = vld [vmem:[#allocation8 + $0x28] sm:$0xff]  }
  0x4f   :  { %1070 = vmatpush3.bf16.msra.mxu0 %v1189_v1  ;;  %1101 = vmatprep.subr.bf16.mxu1 %v1205_v8  ;;  %v1199_v17 = vld [vmem:[#allocation3 + $0x18] sm:$0xff]   ;;  %v1200_v18 = vld [vmem:[#allocation3 + $0x20] sm:$0xff]   ;;  %v1201_v19 = vld [vmem:[#allocation3 + $0x28] sm:$0xff]  }
  0x50   :  { %1071 = vmatprep.subr.bf16.mxu0 %v1190_v2  ;;  %v1202_v20 = vld [vmem:[#allocation3 + $0x30] sm:$0xff]   ;;  %v1203_v21 = vld [vmem:[#allocation3 + $0x38] sm:$0xff]   ;;  %v1212_v24 = vld [vmem:[#allocation9] sm:$0xff]  }
  0x51   :  { %v1210_v22 = vld [vmem:[#allocation8 + $0x30] sm:$0xff]   ;;  %v1211_v23 = vld [vmem:[#allocation8 + $0x38] sm:$0xff]   ;;  %v1213_v25 = vld [vmem:[#allocation9 + $0x8] sm:$0xff]  }
  0x52   :  { %1102 = vmatpush3.bf16.msra.mxu1 %v1205_v8  ;;  %v1214_v26 = vld [vmem:[#allocation9 + $0x10] sm:$0xff]   ;;  %v1525_v27 = vld [vmem:[#allocation9 + $0x18] sm:$0xff]   ;;  %v1528_v28 = vld [vmem:[#allocation9 + $0x20] sm:$0xff]  }
  0x53   :  { %1072 = vmatpush3.bf16.msra.mxu0 %v1190_v2  ;;  %1103 = vmatprep.subr.bf16.mxu1 %v1206_v10  ;;  %v1532_v29 = vld [vmem:[#allocation9 + $0x28] sm:$0xff]   ;;  %v1540_v30 = vld [vmem:[%s1707_s2] ss:$0 sm:$0xff] }
  0x54   :  { %1073 = vmatprep.subr.bf16.mxu0 %v1191_v3 }
  0x56   :  { %1104 = vmatpush3.bf16.msra.mxu1 %v1206_v10 }
  0x57   :  { %1074 = vmatpush3.bf16.msra.mxu0 %v1191_v3  ;;  %1105 = vmatprep.subr.bf16.mxu1 %v1207_v12 }
  0x58   :  { %1075 = vmatprep.subr.bf16.mxu0 %v1192_v5 }
  0x5a   :  { %1106 = vmatpush3.bf16.msra.mxu1 %v1207_v12 }
  0x5b   :  { %1076 = vmatpush3.bf16.msra.mxu0 %v1192_v5  ;;  %1107 = vmatprep.subr.bf16.mxu1 %v1208_v13 }
  0x5c   :  { %1077 = vmatprep.subr.bf16.mxu0 %v1193_v6 }
  0x5e   :  { %1108 = vmatpush3.bf16.msra.mxu1 %v1208_v13 }
  0x5f   :  { %1078 = vmatpush3.bf16.msra.mxu0 %v1193_v6  ;;  %1109 = vmatprep.subr.bf16.mxu1 %v1209_v16 }
  0x60   :  { %1079 = vmatprep.subr.bf16.mxu0 %v1194_v9 }
  0x62   :  { %1110 = vmatpush3.bf16.msra.mxu1 %v1209_v16 }
  0x63   :  { %1080 = vmatpush3.bf16.msra.mxu0 %v1194_v9  ;;  %1111 = vmatprep.subr.bf16.mxu1 %v1210_v22 }
  0x64   :  { %1081 = vmatprep.subr.bf16.mxu0 %v1195_v11 }
  0x66   :  { %1112 = vmatpush3.bf16.msra.mxu1 %v1210_v22 }
  0x67   :  { %1082 = vmatpush3.bf16.msra.mxu0 %v1195_v11  ;;  %1113 = vmatprep.subr.bf16.mxu1 %v1211_v23 }
  0x68   :  { %1131 = vmatprep.subr.bf16.mxu0 %v1212_v24 }
  0x6a   :  { %1084 = vmatmul.mubr.bf16.vlgmr.msra.gmra.mrb[0].mxu0 %v1197_v14  ;;  %1114 = vmatpush3.bf16.msra.mxu1 %v1211_v23  ;;  %v1218_v23 = vld [vmem:[#allocation9 + $0x30] sm:$0xff]  }
  0x6b   :  { %1087 = vmatprep.mubr.bf16.mxu0 %v1198_v15  ;;  %1163 = vmatprep.subr.bf16.mxu1 %v1212_v24 }
  0x6c   :  { %1132 = vmatpush3.bf16.msra.mxu0 %v1212_v24 }
  0x6d   :  { %1133 = vmatprep.subr.bf16.mxu0 %v1213_v25 }
  0x70   :  { %1134 = vmatpush3.bf16.msra.mxu0 %v1213_v25 }
  0x71   :  { %1135 = vmatprep.subr.bf16.mxu0 %v1214_v26 }
  0x72   :  { %1088 = vmatmul.mubr.bf16.gmra.mrb[4].mxu0 %v1199_v17 }
  0x73   :  { %1091 = vmatprep.mubr.bf16.mxu0 %v1200_v18 }
  0x74   :  { %1136 = vmatpush3.bf16.msra.mxu0 %v1214_v26 }
  0x75   :  { %1137 = vmatprep.subr.bf16.mxu0 %v1525_v27 }
  0x78   :  { %1138 = vmatpush3.bf16.msra.mxu0 %v1525_v27 }
  0x79   :  { %1139 = vmatprep.subr.bf16.mxu0 %v1528_v28 }
  0x7a   :  { %1092 = vmatmul.mubr.bf16.gmra.mrb[8].mxu0 %v1201_v19 }
  0x7b   :  { %1095 = vmatprep.mubr.bf16.mxu0 %v1202_v20 }
  0x7c   :  { %1140 = vmatpush3.bf16.msra.mxu0 %v1528_v28 }
  0x7d   :  { %1141 = vmatprep.subr.bf16.mxu0 %v1532_v29 }
  0x80   :  { %1142 = vmatpush3.bf16.msra.mxu0 %v1532_v29 }
  0x81   :  { %1143 = vmatprep.subr.bf16.mxu0 %v1218_v23 }
  0x82   :  { %1096 = vmatmul.mubr.bf16.gmra.mrb[12].mxu0 %v1203_v21 }
  0x84   :  { %1144 = vmatpush3.bf16.msra.mxu0 %v1218_v23 }
 0x13d   :  { %v1085_v31 = vpop.f32.mrb[0].mxu0 }
 0x13e   :  { %v288_v32 = vadd.f32 %v1085_v31, %v1540_v30  ;;  %v279_v33 = vpop.f32.mrb[1].mxu0 }
 0x13f   :  { %v280_v34 = vadd.f32 %v1540_v30, %v279_v33  ;;  %v1086_v35 = vpop.f32.mrb[2].mxu0 }
 0x140   :  { %v291_v36 = vadd.f32 %v1086_v35, %v1540_v30  ;;  %v282_v37 = vpop.f32.mrb[3].mxu0  ;;  %v344_v39 = vmax.f32 %v288_v32, 0.0 }
 0x141   :  { %v283_v38 = vadd.f32 %v1540_v30, %v282_v37  ;;  %v342_v41 = vmax.f32 %v280_v34, 0.0 }
 0x142   :  { %v345_v40 = vmax.f32 %v291_v36, 0.0 }
 0x143   :  { %v343_v42 = vmax.f32 %v283_v38, 0.0 }
 0x144   :  { %v375_v43 = vpack.c.bf16 %v345_v40, %v344_v39 }
 0x145   :  { %v1089_v44 = vpop.f32.mrb[4].mxu0  ;;  %v374_v45 = vpack.c.bf16 %v343_v42, %v342_v41 }
 0x146   :  { %v304_v46 = vadd.f32 %v1089_v44, %v1540_v30  ;;  %v295_v47 = vpop.f32.mrb[5].mxu0 }
 0x147   :  { %v296_v48 = vadd.f32 %v1540_v30, %v295_v47  ;;  %v1090_v49 = vpop.f32.mrb[6].mxu0  ;;  %1115 = vmatprep.mubr.bf16.mxu1 %v374_v45 }
 0x148   :  { %v348_v50 = vmax.f32 %v304_v46, 0.0  ;;  %v307_v51 = vadd.f32 %v1090_v49, %v1540_v30  ;;  %v298_v52 = vpop.f32.mrb[7].mxu0  ;;  %1116 = vmatmul.mubr.bf16.vlgmr.msra.gmra.mrb[0].mxu1 %v375_v43 }
 0x149   :  { %v299_v53 = vadd.f32 %v1540_v30, %v298_v52  ;;  %1171 = vmatpush3.bf16.msra.mxu1 %v1212_v24  ;;  %v346_v55 = vmax.f32 %v296_v48, 0.0  ;;  %v1219_v24 = vld [vmem:[#allocation9 + $0x38] sm:$0xff]  }
 0x14a   :  { %v349_v54 = vmax.f32 %v307_v51, 0.0  ;;  %1164 = vmatprep.subr.bf16.mxu1 %v1213_v25  ;;  %1145 = vmatprep.subr.bf16.mxu0 %v1219_v24 }
 0x14b   :  { %v347_v56 = vmax.f32 %v299_v53, 0.0  ;;  %1146 = vmatpush3.bf16.msra.mxu0 %v1219_v24 }
 0x14c   :  { %v377_v57 = vpack.c.bf16 %v349_v54, %v348_v50 }
 0x14d   :  { %v376_v58 = vpack.c.bf16 %v347_v56, %v346_v55  ;;  %v1093_v59 = vpop.f32.mrb[8].mxu0  ;;  %1172 = vmatpush3.bf16.msra.mxu1 %v1213_v25  ;;  %v984_v25 = vld [vmem:[%s1709_s4] ss:$0 sm:$0xff] }
 0x14e   :  { %v320_v60 = vadd.f32 %v1093_v59, %v1540_v30  ;;  %v311_v61 = vpop.f32.mrb[9].mxu0  ;;  %1165 = vmatprep.subr.bf16.mxu1 %v1214_v26 }
 0x14f   :  { %v312_v62 = vadd.f32 %v1540_v30, %v311_v61  ;;  %v1094_v63 = vpop.f32.mrb[10].mxu0  ;;  %1119 = vmatprep.mubr.bf16.mxu1 %v376_v58 }
 0x150   :  { %v352_v0 = vmax.f32 %v320_v60, 0.0  ;;  %v323_v1 = vadd.f32 %v1094_v63, %v1540_v30  ;;  %v314_v2 = vpop.f32.mrb[11].mxu0  ;;  %1120 = vmatmul.mubr.bf16.gmra.mrb[4].mxu1 %v377_v57 }
 0x151   :  { %v315_v3 = vadd.f32 %v1540_v30, %v314_v2  ;;  %1173 = vmatpush3.bf16.msra.mxu1 %v1214_v26  ;;  %v350_v5 = vmax.f32 %v312_v62, 0.0  ;;  %v770_v2 = vlaneseq }
 0x152   :  { %v353_v4 = vmax.f32 %v323_v1, 0.0  ;;  %1166 = vmatprep.subr.bf16.mxu1 %v1525_v27 }
 0x153   :  { %v351_v6 = vmax.f32 %v315_v3, 0.0  ;;  %v1567_v3 = vand.u32 127, %v770_v2 }
 0x154   :  { %v379_v7 = vpack.c.bf16 %v353_v4, %v352_v0  ;;  %v1010_v4 = vld [vmem:[%s1711_s6] ss:$0 sm:$0xff]  ;;  %s1408_s6 = smov [#allocation11]  }
 0x155   :  { %v378_v8 = vpack.c.bf16 %v351_v6, %v350_v5  ;;  %v1097_v9 = vpop.f32.mrb[12].mxu0  ;;  %1174 = vmatpush3.bf16.msra.mxu1 %v1525_v27  ;;  %vm772_vm0 = vcmp.lt.s32.totalorder %v1567_v3, 16  ;;  %s970_s28 = sshll.u32 %s1408_s6, 4  ;;  %s971_s28 = int_to_ptr.vmem [resolvable:$true] %s970_s28 }
 0x156   :  { %v336_v10 = vadd.f32 %v1097_v9, %v1540_v30  ;;  %v327_v11 = vpop.f32.mrb[13].mxu0  ;;  %1167 = vmatprep.subr.bf16.mxu1 %v1528_v28  ;;  %s1372_s29 = scalar_lea.vmem %s971_s28, 2048  ;;  %p1377_p5 = scmp.lt.s32.totalorder %s971_s28, %s971_s28 }
 0x157   :  { %v328_v12 = vadd.f32 %v1540_v30, %v327_v11  ;;  %v1098_v13 = vpop.f32.mrb[14].mxu0  ;;  %1123 = vmatprep.mubr.bf16.mxu1 %v378_v8  ;;  %p1373_p4 = scmp.ne.s32.totalorder %s971_s28, %s1372_s29  ;;  %p1378_p6 = scmp.lt.s32.totalorder %s1372_s29, %s1372_s29 }
 0x158   :  { %v356_v14 = vmax.f32 %v336_v10, 0.0  ;;  %v339_v15 = vadd.f32 %v1098_v13, %v1540_v30  ;;  %v330_v16 = vpop.f32.mrb[15].mxu0  ;;  %1124 = vmatmul.mubr.bf16.gmra.mrb[8].mxu1 %v379_v7 }
 0x159   :  { %v331_v17 = vadd.f32 %v1540_v30, %v330_v16  ;;  %1175 = vmatpush3.bf16.msra.mxu1 %v1528_v28  ;;  %v354_v19 = vmax.f32 %v328_v12, 0.0  ;;  %p1379_p7 = por %p1378_p6, %p1377_p5 }
 0x15a   :  { %v357_v18 = vmax.f32 %v339_v15, 0.0  ;;  %1168 = vmatprep.subr.bf16.mxu1 %v1532_v29 }
 0x15b   :  { %v355_v20 = vmax.f32 %v331_v17, 0.0  ;;  %p1380_p8 = pnand %p1379_p7, %p1373_p4 }
 0x15c   :  { %v381_v21 = vpack.c.bf16 %v357_v18, %v356_v14 }
 0x15d   :  { %v380_v22 = vpack.c.bf16 %v355_v20, %v354_v19  ;;  %1176 = vmatpush3.bf16.msra.mxu1 %v1532_v29 }
 0x15e   :  { %1169 = vmatprep.subr.bf16.mxu1 %v1218_v23 }
 0x15f   :  { %1127 = vmatprep.mubr.bf16.mxu1 %v380_v22 }
 0x160   :  { %1128 = vmatmul.mubr.bf16.gmra.mrb[12].mxu1 %v381_v21 }
 0x161   :  { %1177 = vmatpush3.bf16.msra.mxu1 %v1218_v23 }
 0x162   :  { %1170 = vmatprep.subr.bf16.mxu1 %v1219_v24 }
 0x165   :  { %1178 = vmatpush3.bf16.msra.mxu1 %v1219_v24 }
 0x21b   :  { %v1117_v26 = vpop.f32.mrb[0].mxu1 }
 0x21c   :  { %v480_v27 = vpop.f32.mrb[1].mxu1  ;;  %v545_v29 = vadd.f32 %v1117_v26, %v984_v25 }
 0x21d   :  { %v1118_v28 = vpop.f32.mrb[2].mxu1  ;;  %v543_v32 = vadd.f32 %v984_v25, %v480_v27 }
 0x21e   :  { %v546_v30 = vadd.f32 %v1118_v28, %v984_v25  ;;  %v483_v31 = vpop.f32.mrb[3].mxu1 }
 0x21f   :  { %v544_v33 = vadd.f32 %v984_v25, %v483_v31 }
 0x220   :  { %v595_v34 = vpack.c.bf16 %v546_v30, %v545_v29 }
 0x221   :  { %v594_v35 = vpack.c.bf16 %v544_v33, %v543_v32 }
 0x223   :  { %v1121_v36 = vpop.f32.mrb[4].mxu1  ;;  %1147 = vmatprep.mubr.bf16.mxu0 %v594_v35 }
 0x224   :  { %v496_v37 = vpop.f32.mrb[5].mxu1  ;;  %1148 = vmatmul.mubr.bf16.vlgmr.msra.gmra.mrb[16].mxu0 %v595_v34  ;;  %v549_v39 = vadd.f32 %v1121_v36, %v984_v25 }
 0x225   :  { %v1122_v38 = vpop.f32.mrb[6].mxu1  ;;  %v547_v42 = vadd.f32 %v984_v25, %v496_v37 }
 0x226   :  { %v550_v40 = vadd.f32 %v1122_v38, %v984_v25  ;;  %v499_v41 = vpop.f32.mrb[7].mxu1 }
 0x227   :  { %v548_v43 = vadd.f32 %v984_v25, %v499_v41 }
 0x228   :  { %v597_v44 = vpack.c.bf16 %v550_v40, %v549_v39 }
 0x229   :  { %v596_v45 = vpack.c.bf16 %v548_v43, %v547_v42 }
 0x22b   :  { %v1125_v46 = vpop.f32.mrb[8].mxu1  ;;  %1151 = vmatprep.mubr.bf16.mxu0 %v596_v45 }
 0x22c   :  { %v512_v47 = vpop.f32.mrb[9].mxu1  ;;  %1152 = vmatmul.mubr.bf16.gmra.mrb[20].mxu0 %v597_v44  ;;  %v553_v49 = vadd.f32 %v1125_v46, %v984_v25 }
 0x22d   :  { %v1126_v48 = vpop.f32.mrb[10].mxu1  ;;  %v551_v52 = vadd.f32 %v984_v25, %v512_v47 }
 0x22e   :  { %v554_v50 = vadd.f32 %v1126_v48, %v984_v25  ;;  %v515_v51 = vpop.f32.mrb[11].mxu1 }
 0x22f   :  { %v552_v53 = vadd.f32 %v984_v25, %v515_v51 }
 0x230   :  { %v599_v54 = vpack.c.bf16 %v554_v50, %v553_v49 }
 0x231   :  { %v598_v55 = vpack.c.bf16 %v552_v53, %v551_v52 }
 0x233   :  { %v1129_v56 = vpop.f32.mrb[12].mxu1  ;;  %1155 = vmatprep.mubr.bf16.mxu1 %v598_v55 }
 0x234   :  { %v528_v57 = vpop.f32.mrb[13].mxu1  ;;  %1156 = vmatmul.mubr.bf16.vlgmr.msra.gmra.mrb[16].mxu1 %v599_v54  ;;  %v557_v59 = vadd.f32 %v1129_v56, %v984_v25 }
 0x235   :  { %v1130_v58 = vpop.f32.mrb[14].mxu1  ;;  %v555_v62 = vadd.f32 %v984_v25, %v528_v57 }
 0x236   :  { %v558_v60 = vadd.f32 %v1130_v58, %v984_v25  ;;  %v531_v61 = vpop.f32.mrb[15].mxu1 }
 0x237   :  { %v556_v63 = vadd.f32 %v984_v25, %v531_v61 }
 0x238   :  { %v601_v0 = vpack.c.bf16 %v558_v60, %v557_v59 }
 0x239   :  { %v600_v1 = vpack.c.bf16 %v556_v63, %v555_v62 }
 0x23b   :  { %1159 = vmatprep.mubr.bf16.mxu1 %v600_v1 }
 0x23c   :  { %1160 = vmatmul.mubr.bf16.gmra.mrb[20].mxu1 %v601_v0 }
 0x2f7   :  { %v1149_v5 = vpop.f32.mrb[16].mxu0 }
 0x2f8   :  { %v716_v6 = vadd.f32 %v1149_v5, %v1010_v4  ;;  %v707_v7 = vpop.f32.mrb[17].mxu0 }
 0x2f9   :  { %v708_v8 = vadd.f32 %v1010_v4, %v707_v7  ;;  %v1150_v9 = vpop.f32.mrb[18].mxu0 }
 0x2fa   :  { %v719_v10 = vadd.f32 %v1150_v9, %v1010_v4  ;;  %v710_v11 = vpop.f32.mrb[19].mxu0  ;;  %v775_v12 = vsel %vm772_vm0, %v716_v6, -1e+30 }
 0x2fb   :  { %v711_v13 = vadd.f32 %v1010_v4, %v710_v11  ;;  %793 = vmax.xlane.f32.xlu1 %v775_v12  ;;  %v773_v14 = vsel %vm772_vm0, %v708_v8, -1e+30 }
 0x2fc   :  { %789 = vmax.xlane.f32.xlu0 %v773_v14  ;;  %v776_v15 = vsel %vm772_vm0, %v719_v10, -1e+30 }
 0x2fd   :  { %v774_v17 = vsel %vm772_vm0, %v711_v13, -1e+30 }
 0x2ff   :  { %795 = vmax.xlane.f32.xlu1 %v776_v15  ;;  %v1153_v16 = vpop.f32.mrb[20].mxu0 }
 0x300   :  { %v732_v18 = vadd.f32 %v1153_v16, %v1010_v4  ;;  %v723_v19 = vpop.f32.mrb[21].mxu0  ;;  %791 = vmax.xlane.f32.xlu0 %v774_v17 }
 0x301   :  { %v1154_v20 = vpop.f32.mrb[22].mxu0  ;;  %v724_v24 = vadd.f32 %v1010_v4, %v723_v19 }
 0x302   :  { %v735_v21 = vadd.f32 %v1154_v20, %v1010_v4  ;;  %v726_v22 = vpop.f32.mrb[23].mxu0  ;;  %v779_v23 = vsel %vm772_vm0, %v732_v18, -1e+30 }
 0x303   :  { %v727_v25 = vadd.f32 %v1010_v4, %v726_v22  ;;  %v777_v28 = vsel %vm772_vm0, %v724_v24, -1e+30 }
 0x304   :  { %801 = vmax.xlane.f32.xlu0 %v779_v23  ;;  %v780_v26 = vsel %vm772_vm0, %v735_v21, -1e+30 }
 0x305   :  { %803 = vmax.xlane.f32.xlu1 %v780_v26  ;;  %v778_v31 = vsel %vm772_vm0, %v727_v25, -1e+30 }
 0x307   :  { %v1157_v27 = vpop.f32.mrb[16].mxu1 }
 0x308   :  { %v748_v29 = vadd.f32 %v1157_v27, %v1010_v4  ;;  %v739_v30 = vpop.f32.mrb[17].mxu1  ;;  %797 = vmax.xlane.f32.xlu0 %v777_v28 }
 0x309   :  { %v1158_v32 = vpop.f32.mrb[18].mxu1  ;;  %799 = vmax.xlane.f32.xlu1 %v778_v31  ;;  %v740_v36 = vadd.f32 %v1010_v4, %v739_v30 }
 0x30a   :  { %v751_v33 = vadd.f32 %v1158_v32, %v1010_v4  ;;  %v742_v34 = vpop.f32.mrb[19].mxu1  ;;  %v783_v35 = vsel %vm772_vm0, %v748_v29, -1e+30 }
 0x30b   :  { %v743_v37 = vadd.f32 %v1010_v4, %v742_v34  ;;  %v1595_v40 = vsel %vm772_vm0, %v740_v36, -1e+30 }
 0x30c   :  { %809 = vmax.xlane.f32.xlu0 %v783_v35  ;;  %v784_v38 = vsel %vm772_vm0, %v751_v33, -1e+30 }
 0x30d   :  { %811 = vmax.xlane.f32.xlu1 %v784_v38  ;;  %v1600_v42 = vsel %vm772_vm0, %v743_v37, -1e+30 }
 0x30f   :  { %v1161_v39 = vpop.f32.mrb[20].mxu1 }
 0x310   :  { %v755_v41 = vpop.f32.mrb[21].mxu1  ;;  %805 = vmax.xlane.f32.xlu0 %v1595_v40  ;;  %v764_v46 = vadd.f32 %v1161_v39, %v1010_v4 }
 0x311   :  { %v756_v43 = vadd.f32 %v1010_v4, %v755_v41  ;;  %v1162_v44 = vpop.f32.mrb[22].mxu1  ;;  %807 = vmax.xlane.f32.xlu1 %v1600_v42 }
 0x312   :  { %v758_v45 = vpop.f32.mrb[23].mxu1  ;;  %v767_v49 = vadd.f32 %v1162_v44, %v1010_v4  ;;  %v1615_v51 = vsel %vm772_vm0, %v764_v46, -1e+30 }
 0x313   :  { %v759_v47 = vadd.f32 %v1010_v4, %v758_v45  ;;  %v1605_v48 = vsel %vm772_vm0, %v756_v43, -1e+30 }
 0x314   :  { %813 = vmax.xlane.f32.xlu0 %v1605_v48  ;;  %v1620_v52 = vsel %vm772_vm0, %v767_v49, -1e+30 }
 0x315   :  { %v1610_v50 = vsel %vm772_vm0, %v759_v47, -1e+30 }
 0x316   :  { %815 = vmax.xlane.f32.xlu1 %v1610_v50 }
 0x318   :  { %817 = vmax.xlane.f32.xlu0 %v1615_v51 }
 0x31a   :  { %819 = vmax.xlane.f32.xlu1 %v1620_v52 }
 0x388   :  { %v794_v53 = vpop.xlane.xlu1 %793 }
 0x389   :  { %v1623_v54 = vsub.f32 %v775_v12, %v794_v53  ;;  %v790_v55 = vpop.xlane.xlu0 %789 }
 0x38a   :  { %v1625_v56 = vsub.f32 %v773_v14, %v790_v55 }
 0x38b   :  { %v841_v57 = vmul.f32 1.442695, %v1623_v54 }
 0x38c   :  { %v837_v58 = vmul.f32 1.442695, %v1625_v56  ;;  %v796_v59 = vpop.xlane.xlu1 %795 }
 0x38d   :  { %1220 = vpow2.f32 %v841_v57  ;;  %v1629_v60 = vsub.f32 %v776_v15, %v796_v59  ;;  %v792_v61 = vpop.xlane.xlu0 %791 }
 0x38e   :  { %v1631_v62 = vsub.f32 %v774_v17, %v792_v61  ;;  %1222 = vpow2.f32 %v837_v58 }
 0x38f   :  { %v843_v63 = vmul.f32 1.442695, %v1629_v60 }
 0x390   :  { %v839_v0 = vmul.f32 1.442695, %v1631_v62 }
 0x391   :  { %1224 = vpow2.f32 %v843_v63  ;;  %v802_v1 = vpop.xlane.xlu0 %801 }
 0x392   :  { %v1635_v2 = vsub.f32 %v779_v23, %v802_v1  ;;  %v804_v3 = vpop.xlane.xlu1 %803  ;;  %1226 = vpow2.f32 %v839_v0 }
 0x393   :  { %v1637_v4 = vsub.f32 %v780_v26, %v804_v3 }
 0x394   :  { %v849_v5 = vmul.f32 1.442695, %v1635_v2 }
 0x395   :  { %v851_v6 = vmul.f32 1.442695, %v1637_v4  ;;  %v798_v7 = vpop.xlane.xlu0 %797 }
 0x396   :  { %1228 = vpow2.f32 %v849_v5  ;;  %v1641_v8 = vsub.f32 %v777_v28, %v798_v7  ;;  %v800_v9 = vpop.xlane.xlu1 %799 }
 0x397   :  { %v1221_v10 = vpop.eup %1220  ;;  %v1643_v11 = vsub.f32 %v778_v31, %v800_v9  ;;  %1230 = vpow2.f32 %v851_v6 }
 0x398   :  { %v845_v12 = vmul.f32 1.442695, %v1641_v8  ;;  %873 = vadd.xlane.f32.xlu0 %v1221_v10  ;;  %v1223_v15 = vpop.eup %1222 }
 0x399   :  { %v847_v13 = vmul.f32 1.442695, %v1643_v11  ;;  %v810_v14 = vpop.xlane.xlu0 %809 }
 0x39a   :  { %1232 = vpow2.f32 %v845_v12  ;;  %v1647_v16 = vsub.f32 %v783_v35, %v810_v14  ;;  %v812_v17 = vpop.xlane.xlu1 %811 }
 0x39b   :  { %v1225_v18 = vpop.eup %1224  ;;  %v1649_v19 = vsub.f32 %v784_v38, %v812_v17  ;;  %1234 = vpow2.f32 %v847_v13 }
 0x39c   :  { %v857_v20 = vmul.f32 1.442695, %v1647_v16  ;;  %875 = vadd.xlane.f32.xlu1 %v1225_v18  ;;  %869 = vadd.xlane.f32.xlu0 %v1223_v15  ;;  %v1227_v25 = vpop.eup %1226 }
 0x39d   :  { %v859_v21 = vmul.f32 1.442695, %v1649_v19  ;;  %v806_v22 = vpop.xlane.xlu0 %805 }
 0x39e   :  { %1236 = vpow2.f32 %v857_v20  ;;  %v1654_v23 = vsub.f32 %v1595_v40, %v806_v22  ;;  %v808_v24 = vpop.xlane.xlu1 %807 }
 0x39f   :  { %v1657_v26 = vsub.f32 %v1600_v42, %v808_v24  ;;  %1238 = vpow2.f32 %v859_v21 }
 0x3a0   :  { %v1229_v27 = vpop.eup %1228  ;;  %v853_v28 = vmul.f32 1.442695, %v1654_v23  ;;  %871 = vadd.xlane.f32.xlu1 %v1227_v25 }
 0x3a1   :  { %v855_v29 = vmul.f32 1.442695, %v1657_v26  ;;  %881 = vadd.xlane.f32.xlu0 %v1229_v27  ;;  %v814_v30 = vpop.xlane.xlu0 %813  ;;  %v1231_v32 = vpop.eup %1230 }
 0x3a2   :  { %1240 = vpow2.f32 %v853_v28  ;;  %v1662_v31 = vsub.f32 %v1605_v48, %v814_v30 }
 0x3a3   :  { %v816_v33 = vpop.xlane.xlu1 %815  ;;  %1242 = vpow2.f32 %v855_v29 }
 0x3a4   :  { %v1233_v34 = vpop.eup %1232  ;;  %v861_v35 = vmul.f32 1.442695, %v1662_v31  ;;  %v1666_v36 = vsub.f32 %v1610_v50, %v816_v33  ;;  %883 = vadd.xlane.f32.xlu1 %v1231_v32 }
 0x3a5   :  { %877 = vadd.xlane.f32.xlu0 %v1233_v34  ;;  %v818_v37 = vpop.xlane.xlu0 %817  ;;  %v1235_v40 = vpop.eup %1234 }
 0x3a6   :  { %1244 = vpow2.f32 %v861_v35  ;;  %v863_v38 = vmul.f32 1.442695, %v1666_v36  ;;  %v1670_v39 = vsub.f32 %v1615_v51, %v818_v37 }
 0x3a7   :  { %v820_v41 = vpop.xlane.xlu1 %819 }
 0x3a8   :  { %v1237_v42 = vpop.eup %1236  ;;  %1246 = vpow2.f32 %v863_v38  ;;  %v865_v43 = vmul.f32 1.442695, %v1670_v39  ;;  %v1674_v44 = vsub.f32 %v1620_v52, %v820_v41  ;;  %879 = vadd.xlane.f32.xlu1 %v1235_v40 }
 0x3a9   :  { %889 = vadd.xlane.f32.xlu0 %v1237_v42  ;;  %v1239_v46 = vpop.eup %1238 }
 0x3aa   :  { %1248 = vpow2.f32 %v865_v43  ;;  %v867_v45 = vmul.f32 1.442695, %v1674_v44 }
 0x3ac   :  { %v1241_v47 = vpop.eup %1240  ;;  %1250 = vpow2.f32 %v867_v45  ;;  %891 = vadd.xlane.f32.xlu1 %v1239_v46 }
 0x3ad   :  { %885 = vadd.xlane.f32.xlu0 %v1241_v47  ;;  %v1243_v48 = vpop.eup %1242 }
 0x3b0   :  { %v1245_v49 = vpop.eup %1244  ;;  %887 = vadd.xlane.f32.xlu1 %v1243_v48 }
 0x3b1   :  { %893 = vadd.xlane.f32.xlu0 %v1245_v49 }
 0x3b2   :  { %v1247_v50 = vpop.eup %1246 }
 0x3b4   :  { %v1249_v51 = vpop.eup %1248  ;;  %895 = vadd.xlane.f32.xlu1 %v1247_v50 }
 0x3b5   :  { %897 = vadd.xlane.f32.xlu0 %v1249_v51 }
 0x3b6   :  { %v1251_v52 = vpop.eup %1250 }
 0x3b8   :  { %899 = vadd.xlane.f32.xlu1 %v1251_v52 }
 0x425   :  { %v874_v53 = vpop.xlane.xlu0 %873 }
 0x426   :  { %1252 = vlog2.f32 %v874_v53 }
 0x429   :  { %v876_v55 = vpop.xlane.xlu1 %875  ;;  %v870_v57 = vpop.xlane.xlu0 %869 }
 0x42a   :  { %1254 = vlog2.f32 %v876_v55 }
 0x42b   :  { %1256 = vlog2.f32 %v870_v57 }
 0x42d   :  { %v872_v58 = vpop.xlane.xlu1 %871 }
 0x42e   :  { %1258 = vlog2.f32 %v872_v58  ;;  %v882_v59 = vpop.xlane.xlu0 %881 }
 0x42f   :  { %1260 = vlog2.f32 %v882_v59 }
 0x430   :  { %v1253_v61 = vpop.eup %1252 }
 0x431   :  { %v906_v63 = vmul.f32 0.6931472, %v1253_v61  ;;  %v884_v0 = vpop.xlane.xlu1 %883 }
 0x432   :  { %1262 = vlog2.f32 %v884_v0  ;;  %v878_v1 = vpop.xlane.xlu0 %877 }
 0x433   :  { %v935_v3 = vsub.f32 %v1623_v54, %v906_v63  ;;  %1264 = vlog2.f32 %v878_v1 }
 0x434   :  { %v1255_v5 = vpop.eup %1254 }
 0x435   :  { %v1257_v6 = vpop.eup %1256  ;;  %951 = vst [vmem:[#allocation11 + $0x10] sm:$0xff] %v935_v3  ;;  %v908_v7 = vmul.f32 0.6931472, %v1255_v5  ;;  %v880_v9 = vpop.xlane.xlu1 %879 }
 0x436   :  { %v902_v10 = vmul.f32 0.6931472, %v1257_v6  ;;  %1266 = vlog2.f32 %v880_v9  ;;  %v890_v12 = vpop.xlane.xlu0 %889 }
 0x437   :  { %v936_v13 = vsub.f32 %v1629_v60, %v908_v7  ;;  %1268 = vlog2.f32 %v890_v12 }
 0x438   :  { %v1259_v14 = vpop.eup %1258  ;;  %v933_v15 = vsub.f32 %v1625_v56, %v902_v10 }
 0x439   :  { %v1261_v17 = vpop.eup %1260  ;;  %952 = vst [vmem:[#allocation11 + $0x18] sm:$0xff] %v936_v13  ;;  %v904_v18 = vmul.f32 0.6931472, %v1259_v14  ;;  %v892_v20 = vpop.xlane.xlu1 %891 }
 0x43a   :  { %949 = vst [vmem:[#allocation11] sm:$0xff] %v933_v15  ;;  %v914_v54 = vmul.f32 0.6931472, %v1261_v17  ;;  %1270 = vlog2.f32 %v892_v20  ;;  %v886_v21 = vpop.xlane.xlu0 %885 }
 0x43b   :  { %v934_v22 = vsub.f32 %v1631_v62, %v904_v18  ;;  %1272 = vlog2.f32 %v886_v21 }
 0x43c   :  { %v1263_v24 = vpop.eup %1262  ;;  %v939_v25 = vsub.f32 %v1635_v2, %v914_v54 }
 0x43d   :  { %v1265_v27 = vpop.eup %1264  ;;  %950 = vst [vmem:[#allocation11 + $0x8] sm:$0xff] %v934_v22  ;;  %v916_v60 = vmul.f32 0.6931472, %v1263_v24  ;;  %v888_v28 = vpop.xlane.xlu1 %887 }
 0x43e   :  { %955 = vst [vmem:[#allocation11 + $0x30] sm:$0xff] %v939_v25  ;;  %v910_v56 = vmul.f32 0.6931472, %v1265_v27  ;;  %1274 = vlog2.f32 %v888_v28  ;;  %v894_v29 = vpop.xlane.xlu0 %893 }
 0x43f   :  { %v940_v30 = vsub.f32 %v1637_v4, %v916_v60  ;;  %1276 = vlog2.f32 %v894_v29 }
 0x440   :  { %v1267_v32 = vpop.eup %1266  ;;  %v937_v33 = vsub.f32 %v1641_v8, %v910_v56 }
 0x441   :  { %v1269_v34 = vpop.eup %1268  ;;  %956 = vst [vmem:[#allocation11 + $0x38] sm:$0xff] %v940_v30  ;;  %v912_v62 = vmul.f32 0.6931472, %v1267_v32  ;;  %v896_v35 = vpop.xlane.xlu1 %895 }
 0x442   :  { %953 = vst [vmem:[#allocation11 + $0x20] sm:$0xff] %v937_v33  ;;  %v922_v2 = vmul.f32 0.6931472, %v1269_v34  ;;  %1278 = vlog2.f32 %v896_v35  ;;  %v898_v37 = vpop.xlane.xlu0 %897 }
 0x443   :  { %v938_v38 = vsub.f32 %v1643_v11, %v912_v62  ;;  %1280 = vlog2.f32 %v898_v37 }
 0x444   :  { %v1271_v40 = vpop.eup %1270  ;;  %v943_v41 = vsub.f32 %v1647_v16, %v922_v2 }
 0x445   :  { %v1273_v42 = vpop.eup %1272  ;;  %954 = vst [vmem:[#allocation11 + $0x28] sm:$0xff] %v938_v38  ;;  %v924_v4 = vmul.f32 0.6931472, %v1271_v40  ;;  %v900_v43 = vpop.xlane.xlu1 %899 }
 0x446   :  { %959 = vst [vmem:[#allocation11 + $0x50] sm:$0xff] %v943_v41  ;;  %v918_v8 = vmul.f32 0.6931472, %v1273_v42  ;;  %1282 = vlog2.f32 %v900_v43 }
 0x447   :  { %v944_v45 = vsub.f32 %v1649_v19, %v924_v4 }
 0x448   :  { %v1275_v46 = vpop.eup %1274  ;;  %v941_v47 = vsub.f32 %v1654_v23, %v918_v8 }
 0x449   :  { %v1277_v48 = vpop.eup %1276  ;;  %960 = vst [vmem:[#allocation11 + $0x58] sm:$0xff] %v944_v45  ;;  %v920_v49 = vmul.f32 0.6931472, %v1275_v46 }
 0x44a   :  { %957 = vst [vmem:[#allocation11 + $0x40] sm:$0xff] %v941_v47  ;;  %v926_v11 = vmul.f32 0.6931472, %v1277_v48 }
 0x44b   :  { %v942_v50 = vsub.f32 %v1657_v26, %v920_v49 }
 0x44c   :  { %v1279_v16 = vpop.eup %1278  ;;  %v945_v51 = vsub.f32 %v1662_v31, %v926_v11 }
 0x44d   :  { %v1281_v52 = vpop.eup %1280  ;;  %958 = vst [vmem:[#allocation11 + $0x48] sm:$0xff] %v942_v50  ;;  %v928_v53 = vmul.f32 0.6931472, %v1279_v16 }
 0x44e   :  { %961 = vst [vmem:[#allocation11 + $0x60] sm:$0xff] %v945_v51  ;;  %v930_v55 = vmul.f32 0.6931472, %v1281_v52 }
 0x44f   :  { %v946_v19 = vsub.f32 %v1666_v36, %v928_v53 }
 0x450   :  { %v1283_v57 = vpop.eup %1282  ;;  %v947_v23 = vsub.f32 %v1670_v39, %v930_v55 }
 0x451   :  { %962 = vst [vmem:[#allocation11 + $0x68] sm:$0xff] %v946_v19  ;;  %v932_v58 = vmul.f32 0.6931472, %v1283_v57 }
 0x452   :  { %963 = vst [vmem:[#allocation11 + $0x70] sm:$0xff] %v947_v23 }
 0x453   :  { %v948_v26 = vsub.f32 %v1674_v44, %v932_v58 }
 0x455   :  { %964 = vst [vmem:[#allocation11 + $0x78] sm:$0xff] %v948_v26 }
 0x456   :  { %1383 = shalt.err (!%p1380_p8)
}
 0x457   :  { %s1384_s9 = scalar_lea.hbm %s1712_s7, 2048 }
 0x458   :  { %p1385_p9 = scmp.ne.s32.totalorder %s1712_s7, %s1384_s9  ;;  %p1388_p10 = scmp.lt.u32.totalorder %s1384_s9, %s1712_s7 }
 0x45a   :  { %p1390_p11 = pnand %p1388_p10, %p1385_p9 }
 0x45c   :  { %1393 = shalt.err (!%p1390_p11)
}
 0x45d   :  { %s1409_s16 = smov 128   ;;  %s1410_s0 = smov 8  }
 0x45e   :  { %976 = dma.vmem_to_hbm [thread:$0]  %s971_s28, 2048, %s1712_s7, [#allocation5], %s1409_s16, %s1409_s16, %s1410_s0  }
 0x45f   :  { %1400 = dma.done.wait [#allocation5], 2048  }
 0x460   :  { %1401 = vsyncadd [#allocation5], 4294965248 }
 0x461   :  { %980 = vsyncpa [#allocation4], 1 }
 0x462   :  { %981 = vsyncpa [#allocation7], 1 }
 0x463   :  { %982 = vsyncpa [#allocation10], 1 }
 0x464   :  { %983 = vsyncpa [#allocation5], 1 }

</bundles_post_ra>
